<compile_context>
chip_gen: v7x
topology: tpu7x:2x2x1
jax: 0.10.0
libtpu: 0.0.40
codegen_flags: <defaults>
</compile_context>

<pallas_src>
import functools

import jax
import jax.numpy as jnp
from jax import lax
from jax.experimental import pallas as pl
from jax.experimental.pallas import tpu as pltpu


LANE = 128                      # TPU lane width; head dim zero-padded to this.
VMEM_LIMIT = 32 * 1024 * 1024   # >= v5e default (16 MiB), == v6e/v7x default.


def _qkv_proj_kernel(x_ref, w_ref, qkv_ref, *, ones_col):
    # x_ref: (tm, C) bf16, w_ref: (C, 3*Hp) bf16, qkv_ref: (tm, 3*Hp) bf16
    acc = jnp.dot(x_ref[...], w_ref[...], preferred_element_type=jnp.float32)
    # Write 1.0 into the first padding lane of the V slab so the attention
    # kernel's PV matmul also accumulates the softmax row-sum on the MXU.
    lane = lax.broadcasted_iota(jnp.int32, acc.shape, 1)
    acc = jnp.where(lane == ones_col, 1.0, acc)
    qkv_ref[...] = acc.astype(qkv_ref.dtype)


def _attn_kernel(q_ref, k_ref, v_ref, o_ref, m_sc, acc_sc, *, ones_lane):
    # q_ref: (1, tq, Hp) bf16 (pre-scaled), k_ref/v_ref: (1, tk, Hp) bf16
    # o_ref: (1, tq, Hp) bf16; m_sc: running max; acc_sc: output accumulator
    # whose lane `ones_lane` carries the running softmax denominator l.
    ki = pl.program_id(2)

    @pl.when(ki == 0)
    def _init():
        m_sc[...] = jnp.full(m_sc.shape, -jnp.inf, dtype=m_sc.dtype)
        acc_sc[...] = jnp.zeros(acc_sc.shape, dtype=acc_sc.dtype)

    q = q_ref[0]          # (tq, Hp)
    k = k_ref[0]          # (tk, Hp)
    v = v_ref[0]          # (tk, Hp), lane `ones_lane` == 1.0

    # q . k contracted over the head axis of both operands -> (tq, tk).
    # No k.T transpose; zero-padded head lanes are inert.  Softmax scale is
    # already folded into q via w_query.
    s = lax.dot_general(
        q, k, (((1,), (1,)), ((), ())), preferred_element_type=jnp.float32
    )

    m_prev = m_sc[...]                                      # (tq, 1)
    m_new = jnp.maximum(m_prev, s.max(axis=-1, keepdims=True))
    alpha = jnp.exp(m_prev - m_new)                         # rescale factor
    p = jnp.exp(s - m_new)                                  # (tq, tk) f32
    # PV matmul also accumulates l = sum(p) in lane `ones_lane` (V's ones
    # column), so no separate l scratch / p.sum XLU reduce is needed.
    acc_sc[...] = alpha * acc_sc[...] + jnp.dot(
        p.astype(v.dtype), v, preferred_element_type=jnp.float32
    )
    m_sc[...] = m_new

    @pl.when(ki == pl.num_programs(2) - 1)
    def _finalize():
        acc = acc_sc[...]                                   # (tq, Hp) f32
        lane = lax.broadcasted_iota(jnp.int32, acc.shape, 1)
        l = jnp.sum(jnp.where(lane == ones_lane, acc, 0.0),
                    axis=-1, keepdims=True)                 # (tq, 1), once/q-block
        inv_l = pl.reciprocal(l, approx=True)               # EUP slot, ~free
        o_ref[0] = (acc * inv_l).astype(o_ref.dtype)


def head_forward(x, w_key, w_query, w_value, *, block_q=1024, block_k=1024,
                 block_rows=1024):
    """x: (B, T, C) f32; w_*: (C, H) f32  ->  (B, T, H) f32."""
    B, T, C = x.shape
    H = w_key.shape[1]
    Hp = LANE * pl.cdiv(H, LANE)          # head dim padded to a lane multiple

    # Fold the 1/sqrt(H) attention scale into the query weights (free), pad
    # each head slab to Hp lanes, and fuse into one (C, 3*Hp) weight so the
    # projection is a single lane-dense MXU matmul.
    scale = float(H) ** -0.5
    pad = lambda w: jnp.pad(w, ((0, 0), (0, Hp - H)))
    w_qkv = jnp.concatenate(
        [pad(w_query * scale), pad(w_key), pad(w_value)], axis=1
    ).astype(jnp.bfloat16)                # (C, 3*Hp): [q | k | v]

    # ---- Kernel 1: fused QKV projection over all B*T rows ------------------
    rows = B * T
    tm = min(block_rows, rows)
    # Keep >= 2 blocks on the (parallel) row axis so both v7x TCs get work.
    while rows // tm < 2 and tm > 8 and rows % (tm // 2) == 0:
        tm //= 2
    assert rows % tm == 0, "rows must tile evenly"
    x2 = x.reshape(rows, C).astype(jnp.bfloat16)

    qkv = pl.pallas_call(
        functools.partial(_qkv_proj_kernel, ones_col=2 * Hp + H),
        out_shape=jax.ShapeDtypeStruct((rows, 3 * Hp), jnp.bfloat16),
        grid_spec=pltpu.PrefetchScalarGridSpec(
            num_scalar_prefetch=0,
            grid=(rows // tm,),
            in_specs=[
                pl.BlockSpec((tm, C), lambda m: (m, 0)),
                pl.BlockSpec((C, 3 * Hp), lambda m: (0, 0)),   # grid-invariant
            ],
            out_specs=pl.BlockSpec((tm, 3 * Hp), lambda m: (m, 0)),
        ),
        compiler_params=pltpu.CompilerParams(
            dimension_semantics=("parallel",),
            vmem_limit_bytes=VMEM_LIMIT),
    )(x2, w_qkv)
    qkv = qkv.reshape(B, T, 3 * Hp)       # lanes [0:Hp]=q, [Hp:2Hp]=k, [2Hp:]=v

    # ---- Kernel 2: flash-style attention (no (T,T) materialization) --------
    tq = min(block_q, T)
    # Keep >= 2 blocks across the parallel (B, q) axes for v7x's two TCs.
    while B * (T // tq) < 2 and tq > 8 and T % (tq // 2) == 0:
        tq //= 2
    tk = min(block_k, T)
    assert T % tq == 0 and T % tk == 0, "sequence must tile evenly"

    out_p = pl.pallas_call(
        functools.partial(_attn_kernel, ones_lane=H),
        out_shape=jax.ShapeDtypeStruct((B, T, Hp), jnp.bfloat16),
        grid_spec=pltpu.PrefetchScalarGridSpec(
            num_scalar_prefetch=0,
            grid=(B, T // tq, T // tk),
            in_specs=[
                pl.BlockSpec((1, tq, Hp), lambda b, qi, ki: (b, qi, 0)),  # q
                pl.BlockSpec((1, tk, Hp), lambda b, qi, ki: (b, ki, 1)),  # k
                pl.BlockSpec((1, tk, Hp), lambda b, qi, ki: (b, ki, 2)),  # v
            ],
            out_specs=pl.BlockSpec((1, tq, Hp), lambda b, qi, ki: (b, qi, 0)),
            scratch_shapes=[
                pltpu.VMEM((tq, 1), jnp.float32),   # running max m
                pltpu.VMEM((tq, Hp), jnp.float32),  # output acc (lane H = row-sum)
            ],
        ),
        compiler_params=pltpu.CompilerParams(
            dimension_semantics=("parallel", "parallel", "arbitrary"),
            vmem_limit_bytes=VMEM_LIMIT),
    )(qkv, qkv, qkv)

    # TODO(synk): consumers that accept the Hp-padded bf16 layout should skip
    # this epilogue slice/cast (it is an extra full HBM pass at these sizes).
    return out_p[..., :H].astype(jnp.float32)


def _reference(x, w_key, w_query, w_value):
    # Pure-JAX f32 reference mirroring the PyTorch forward exactly.
    k = x @ w_key
    q = x @ w_query
    v = x @ w_value
    wei = (q @ jnp.swapaxes(k, -2, -1)) * (k.shape[-1] ** -0.5)
    wei = jax.nn.softmax(wei, axis=-1)
    return wei @ v


if __name__ == "__main__":
    # Shapes implied by the module: n_embd (C) = 768, a single head of size 32,
    # with a small batch / sequence for the demo.
    B, T, C, HEAD_SIZE = 2, 8, 768, 32

    key = jax.random.PRNGKey(0)
    kx, kk, kq, kv = jax.random.split(key, 4)

    x = jax.random.normal(kx, (B, T, C), dtype=jnp.float32)

    # nn.Linear(n_embd, head_size, bias=False) weight is (head_size, n_embd);
    # we store its transpose (C, H) so in-kernel matmuls are plain x @ W.
    bound = 1.0 / (C ** 0.5)
    w_key_ = jax.random.uniform(kk, (C, HEAD_SIZE), jnp.float32, -bound, bound)
    w_query = jax.random.uniform(kq, (C, HEAD_SIZE), jnp.float32, -bound, bound)
    w_value = jax.random.uniform(kv, (C, HEAD_SIZE), jnp.float32, -bound, bound)

    out = head_forward(x, w_key_, w_query, w_value)
    out = jax.block_until_ready(out)

    ref = _reference(x, w_key_, w_query, w_value)
    assert out.shape == (B, T, HEAD_SIZE)
    # bf16 MXU operands / bf16 output (f32 accumulation) -> bf16-appropriate
    # tolerance against the f32 reference.
    assert jnp.allclose(out, ref, atol=5e-2, rtol=5e-2), "mismatch vs reference"

    print("KERNEL_OK")
</pallas_src>

<mosaic_0001>
module attributes {stable_mosaic.version = 11 : i64} {
  func.func @_qkv_proj_kernel(%arg0: i32, %arg1: memref<8x768xbf16, #tpu.memory_space<vmem>>, %arg2: memref<768x384xbf16, #tpu.memory_space<vmem>>, %arg3: memref<8x384xbf16, #tpu.memory_space<vmem>>) attributes {dimension_semantics = [#tpu.dimension_semantics<parallel>], iteration_bounds = array<i64: 2>, scalar_prefetch = 0 : i64, scratch_operands = 0 : i64, tpu.core_type = #tpu.core_type<tc>, window_params = [{transform_indices = @transform_0, window_bounds = array<i64: 8, 768>}, {pipeline_mode = #tpu.pipeline_mode<synchronous>, transform_indices = @transform_1, window_bounds = array<i64: 768, 384>}, {transform_indices = @transform_2, window_bounds = array<i64: 8, 384>}]} {
    %c0 = arith.constant 0 : index
    %c0_0 = arith.constant 0 : index
    %0 = vector.load %arg1[%c0, %c0_0] : memref<8x768xbf16, #tpu.memory_space<vmem>>, vector<8x768xbf16>
    %c0_1 = arith.constant 0 : index
    %c0_2 = arith.constant 0 : index
    %1 = vector.load %arg2[%c0_1, %c0_2] : memref<768x384xbf16, #tpu.memory_space<vmem>>, vector<768x384xbf16>
    %cst = arith.constant dense<0.000000e+00> : vector<8x384xf32>
    %2 = tpu.matmul %0, %1, %cst {dimension_numbers = #tpu.dot_dimension_numbers<[1], [0], [0], [1], [0, 0, 1, 1], [], []>} : vector<8x768xbf16>, vector<768x384xbf16>, vector<8x384xf32> -> vector<8x384xf32>
    %3 = tpu.iota {dimensions = array<i32: 1>} : vector<8x384xi32>
    %c288_i32 = arith.constant 288 : i32
    %4 = vector.broadcast %c288_i32 : i32 to vector<8x384xi32>
    %5 = arith.cmpi eq, %3, %4 : vector<8x384xi32>
    %cst_3 = arith.constant 1.000000e+00 : f32
    %6 = vector.broadcast %cst_3 : f32 to vector<8x384xf32>
    %7 = arith.select %5, %6, %2 : vector<8x384xi1>, vector<8x384xf32>
    %8 = arith.truncf %7 : vector<8x384xf32> to vector<8x384xbf16>
    %c0_4 = arith.constant 0 : index
    %c0_5 = arith.constant 0 : index
    %9 = vector.load %arg3[%c0_4, %c0_5] : memref<8x384xbf16, #tpu.memory_space<vmem>>, vector<8x384xbf16>
    tpu.vector_store %arg3[%c0_4, %c0_5], %8 {strides = array<i32>} : memref<8x384xbf16, #tpu.memory_space<vmem>>, vector<8x384xbf16>,
    return
  }
  func.func @transform_0(%arg0: i32) -> (i32, i32) {
    %c0_i32 = arith.constant 0 : i32
    %c0_i32_0 = arith.constant 0 : i32
    return %arg0, %c0_i32 : i32, i32
  }
  func.func @transform_1(%arg0: i32) -> (i32, i32) {
    %c0_i32 = arith.constant 0 : i32
    %c0_i32_0 = arith.constant 0 : i32
    %c0_i32_1 = arith.constant 0 : i32
    return %c0_i32, %c0_i32_0 : i32, i32
  }
  func.func @transform_2(%arg0: i32) -> (i32, i32) {
    %c0_i32 = arith.constant 0 : i32
    %c0_i32_0 = arith.constant 0 : i32
    return %arg0, %c0_i32 : i32, i32
  }
}

</mosaic_0001>

<bundles_post_ra>
// kernel: tpu_custom_call.1
= control target key start
LH: loop header
LB: loop body
LE: loop exit
PB: predicated region body
PF: predicated region fallthrough
CT: control target
= control target key end

     0   :  { %7 = vsyncpa [#allocation3], 0  ;;  %s2393_s0 = inlined_call_operand.hbm [shape: bf16[16,768], index: 0, kind: input, shape index: {}]   ;;  %s2394_s1 = inlined_call_operand.hbm [shape: bf16[768,384], index: 1, kind: input, shape index: {}]   ;;  %s2395_s2 = inlined_call_operand.hbm [shape: bf16[16,384], index: 2, kind: output, shape index: {}]  }
   0x1   :  { %9 = vsyncpa [#allocation3 + $0x1], 0 }
   0x2   :  { %10 = vsyncpa [#allocation6], 0 }
   0x3   :  { %11 = vsyncpa [#allocation4], 0 }
   0x4   :  { %13 = vsyncpa [#allocation4 + $0x1], 0  ;;  %s2171_s9 = smov 0   ;;  %s2173_s10 = smov 0  }
   0x5   :  { %s2175_s11 = smov 0   ;;  %s2177_s12 = smov 0  }
   0x6 LB: > { %s2192_s13 = sadd.s32 4294967295, %s2149_s12   ;;  %s1523_s14 = sadd.s32 4294967294, %s2149_s12   ;;  %s2149_s12 = sphi %s2177_s12, %s2415_s12   ;;  %s2145_s11 = sphi %s2175_s11, %s2414_s11   ;;  %s2141_s10 = sphi %s2173_s10, %s2413_s10   ;;  %s2137_s9 = sphi %s2171_s9, %s2412_s9  }
   0x7   : > { %p39_p0 = scmp.ne.s32.totalorder %s2141_s10, %s2137_s9  ;;  %p2396_p1 = scmp.eq.s32.totalorder %s2192_s13, 0 }
   0x8   : > { %p90_p3 = scmp.eq.s32.totalorder %s1523_s14, 1  ;;  %p1524_p5 = scmp.ge.s32.totalorder %s2149_s12, 1 }
   0x9   : > { %p2201_p4 = por %p2396_p1, %p39_p0  ;;  %p97_p7 = scmp.lt.s32.totalorder %s2149_s12, 3 }
   0xa   : > { %p2206_p6 = por %p90_p3, %p39_p0  ;;  %s2151_s18 = smov [#allocation5]  }
   0xb   : > { %s2399_s15 = scalar_select %p2201_p4, 1, 0 }
   0xc   : > { %s2400_s16 = scalar_select %p2206_p6, 1, 0 }
   0xd   : > { %p2211_p8 = pnand %p1524_p5, %p97_p7  ;;  %s109_s19 = sshll.u32 %s2151_s18, 4  ;;  %s2215_s19 = int_to_ptr.vmem [resolvable:$true] %s109_s19 }
   0xe   : > { %s2227_s21 = sadd.s32 1, %s2149_s12   ;;  %s26_s22 = sadd.s32 1, %s2145_s11 }
   0xf   : > { %s2401_s17 = scalar_select %p2211_p8, 1, 0 }
  0x10   : > { %p1772_p9 = pneg %p2211_p8  ;;  %s23_s23 = ssub.s32 %s2149_s12, %s2227_s21 }
  0x11   : > { %s2021_s26 = scalar_lea.hbm %s2394_s1, 18432 }
  0x12   : > { %p2222_p11 = pnand %p1772_p9, %p2396_p1  ;;  %p2022_p12 = scmp.ne.s32.totalorder %s2394_s1, %s2021_s26 }
  0x13   : > { %p2028_p5 = scmp.lt.u32.totalorder %s2021_s26, %s2394_s1 }
  0x14   : > { %p2023_p13 = pneg %p2222_p11 }
  0x16   : > { %p2024_p0 = pnand %p2023_p13, %p2022_p12 }
  0x18   : > { %p2025_p3 = pneg %p2024_p0 }
  0x1a   : > { %p2030_p7 = pnand %p2028_p5, %p2025_p3 }
  0x1c   : > { %2033 = shalt.err (!%p2030_p7)
}
  0x1d   : > { %s2034_s3 = scalar_lea.vmem %s2215_s19, 18432  ;;  %p2042_p2 = scmp.lt.s32.totalorder %s2215_s19, %s2215_s19 }
  0x1e   : > { %p2035_p9 = scmp.ne.s32.totalorder %s2215_s19, %s2034_s3  ;;  %p2043_p6 = scmp.lt.s32.totalorder %s2034_s3, %s2034_s3 }
  0x20   : > { %p2037_p10 = pnand %p2035_p9, %p2023_p13  ;;  %p2044_p4 = por %p2043_p6, %p2042_p2 }
  0x22   : > { %p2038_p1 = pneg %p2037_p10 }
  0x24   : > { %p2045_p8 = pnand %p2044_p4, %p2038_p1 }
  0x26   : > { %2048 = shalt.err (!%p2045_p8)
}
  0x27   : > { %s2152_s4 = smov 192   ;;  %s2153_s5 = smov 12  }
  0x28   : > { %1775 = dma.hbm_to_vmem [thread:$0]  (!%p2222_p11), %s2394_s1, 18432, %s2215_s19, [#allocation6], %s2152_s4, %s2152_s4, %s2153_s5  }
  0x29   : > { %p24_p2 = scmp.eq.s32.totalorder %s23_s23, 0  ;;  %p33_p1 = scmp.ne.s32.totalorder %s2145_s11, %s2141_s10 }
  0x2a   : > { %p34_p4 = scmp.eq.s32.totalorder %s2149_s12, 0  ;;  %p1785_p6 = scmp.lt.s32.totalorder %s2149_s12, 2 }
  0x2b   : > { %s2258_s8 = scalar_select %p24_p2, %s2145_s11, %s26_s22  }
  0x2c   : > { %p35_p8 = por %p34_p4, %p33_p1  ;;  %p2403_p10 = scmp.eq.s32.totalorder %s2192_s13, 1 }
  0x2d   : > { %s123_s18 = sand.u32 1, %s2145_s11   ;;  %s1760_s24 = smul.u32 384, %s2149_s12 }
  0x2e   : > { %p2262_p12 = por %p2403_p10, %p33_p1  ;;  %s1759_s25 = smul.u32 24, %s123_s18 }
  0x2f   : > { %p2268_p13 = pnand %p1785_p6, %p35_p8  ;;  %s2275_s22 = scalar_lea.hbm %s2393_s0, %s1760_s24 }
  0x30   : > { %s127_s26 = scalar_lea.vmem [#allocation2], %s1759_s25  ;;  %s124_s28 = scalar_lea.sflag [#allocation3], %s123_s18 }
  0x31   : > { %s135_s27 = sshll.u32 %s127_s26, 4  ;;  %s2049_s29 = scalar_lea.hbm %s2275_s22, 384  ;;  %s2277_s27 = int_to_ptr.vmem [resolvable:$true] %s135_s27 }
  0x32   : > { %p2050_p11 = scmp.ne.s32.totalorder %s2275_s22, %s2049_s29  ;;  %p2051_p0 = pneg %p2268_p13 }
  0x33   : > { %s2054_s4 = scalar_lea.hbm %s2393_s0, 768  ;;  %p2055_p7 = scmp.lt.u32.totalorder %s2275_s22, %s2393_s0 }
  0x34   : > { %p2052_p3 = pnand %p2051_p0, %p2050_p11  ;;  %p2056_p9 = scmp.lt.u32.totalorder %s2054_s4, %s2049_s29 }
  0x35   : > { %p2058_p1 = scmp.lt.u32.totalorder %s2049_s29, %s2275_s22 }
  0x36   : > { %p2053_p5 = pneg %p2052_p3  ;;  %p2057_p2 = por %p2056_p9, %p2055_p7 }
  0x38   : > { %p2059_p4 = por %p2058_p1, %p2057_p2 }
  0x3a   : > { %p2060_p6 = pnand %p2059_p4, %p2053_p5 }
  0x3c   : > { %2063 = shalt.err (!%p2060_p6)
}
  0x3d   : > { %s2064_s7 = scalar_lea.vmem %s2277_s27, 384  ;;  %s2154_s18 = smov [#allocation2]  }
  0x3e   : > { %p2065_p8 = scmp.ne.s32.totalorder %s2277_s27, %s2064_s7  ;;  %s2069_s24 = sshll.u32 %s2154_s18, 4  ;;  %s2070_s24 = int_to_ptr.vmem [resolvable:$false] %s2069_s24 }
  0x3f   : > { %s2071_s25 = scalar_lea.vmem %s2070_s24, 768  ;;  %p2072_p3 = scmp.lt.s32.totalorder %s2277_s27, %s2070_s24 }
  0x40   : > { %p2067_p10 = pnand %p2065_p8, %p2051_p0  ;;  %p2073_p7 = scmp.lt.s32.totalorder %s2071_s25, %s2064_s7 }
  0x42   : > { %p2068_p11 = pneg %p2067_p10  ;;  %p2074_p9 = por %p2073_p7, %p2072_p3 }
  0x44   : > { %p2075_p2 = pnand %p2074_p9, %p2068_p11 }
  0x46   : > { %2078 = shalt.err (!%p2075_p2)
}
  0x47   : > { %1779 = dma.hbm_to_vmem [thread:$0]  (!%p2268_p13), %s2275_s22, 384, %s2277_s27, %s124_s28  }
  0x48   : > { %p2406_p5 = scmp.ne.s32.totalorder %s2401_s17, 0 }
  0x49   : > { %s2307_s19 = sand.u32 (!%p2406_p5), 1, %s2141_s10   ;;  %p2407_p0 = scmp.ne.s32.totalorder (!%p2406_p5), %s2399_s15, 0 }
  0x4a   : > { %144 = sbr.rel (%p2406_p5) target bundleno = 480 (0x1e0), region = 28  ;;  %s147_s26 = scalar_lea.sflag (!%p2406_p5), [#allocation3], %s2307_s19 }
  0x4b   : > { %s1761_s23 = smul.u32 (!%p2406_p5), 24, %s2307_s19 }
  0x4d   : > { %s2311_s29 = scalar_lea.vmem (!%p2406_p5), [#allocation2], %s1761_s23 }
  0x51   : > { %2124 = dma.done.wait (%p2407_p0), %s147_s26, 384  }
  0x52   : > { %2126 = vsyncadd (%p2407_p0), %s147_s26, 4294966912  ;;  %p2408_p13 = scmp.eq.s32.totalorder %s2192_s13, 0 }
  0x54   : > { %2128 = dma.done.wait (%p2408_p13), [#allocation6], 18432   ;;  %p2409_p1 = pmov %p2408_p13 }
  0x55   : > { %v1823_v0 = vld [vmem:[#allocation5 + $0x4] ss:$12 sps:$4 sm:$0xff]   ;;  %v1827_v2 = vld [vmem:[#allocation5] ss:$12 sps:$4 sm:$0xff]   ;;  %v1829_v4 = vld [vmem:[#allocation5 + $0x1c] ss:$12 sps:$4 sm:$0xff]  }
  0x56   : > { %2130 = vsyncadd (%p2409_p1), [#allocation6], 4294948864  ;;  %v1825_v1 = vld [vmem:[#allocation5 + $0x184] ss:$12 sps:$4 sm:$0xff]   ;;  %1160 = vmatprep.subr.bf16.mxu1 %v1823_v0  ;;  %v1828_v3 = vld [vmem:[#allocation5 + $0x180] ss:$12 sps:$4 sm:$0xff]  }
  0x57   : > { %1201 = vmatprep.subr.bf16.mxu0 %v1825_v1  ;;  %1161 = vmatpush1.bf16.msra.mxu1 %v1827_v2  ;;  %v1831_v5 = vld [vmem:[#allocation5 + $0x19c] ss:$12 sps:$4 sm:$0xff]   ;;  %v1833_v6 = vld [vmem:[#allocation5 + $0x18] ss:$12 sps:$4 sm:$0xff]   ;;  %v1835_v8 = vld [vmem:[#allocation5 + $0x34] ss:$12 sps:$4 sm:$0xff]  }
  0x58   : > { %1202 = vmatpush1.bf16.msra.mxu0 %v1828_v3  ;;  %1162 = vmatprep.subr.bf16.mxu1 %v1829_v4  ;;  %v1834_v7 = vld [vmem:[#allocation5 + $0x198] ss:$12 sps:$4 sm:$0xff]   ;;  %v1837_v9 = vld [vmem:[#allocation5 + $0x1b4] ss:$12 sps:$4 sm:$0xff]   ;;  %v1839_v10 = vld [vmem:[#allocation5 + $0x30] ss:$12 sps:$4 sm:$0xff]  }
  0x59   : > { %1203 = vmatprep.subr.bf16.mxu0 %v1831_v5  ;;  %v1840_v11 = vld [vmem:[#allocation5 + $0x1b0] ss:$12 sps:$4 sm:$0xff]   ;;  %v1841_v12 = vld [vmem:[#allocation5 + $0x4c] ss:$12 sps:$4 sm:$0xff]   ;;  %v1845_v14 = vld [vmem:[#allocation5 + $0x48] ss:$12 sps:$4 sm:$0xff]  }
  0x5a   : > { %v1843_v13 = vld [vmem:[#allocation5 + $0x1cc] ss:$12 sps:$4 sm:$0xff]   ;;  %v1846_v15 = vld [vmem:[#allocation5 + $0x1c8] ss:$12 sps:$4 sm:$0xff]   ;;  %v1847_v16 = vld [vmem:[#allocation5 + $0x64] ss:$12 sps:$4 sm:$0xff]  }
  0x5b   : > { %1163 = vmatpush1.bf16.msra.mxu1 %v1833_v6  ;;  %v1849_v17 = vld [vmem:[#allocation5 + $0x1e4] ss:$12 sps:$4 sm:$0xff]   ;;  %v1851_v18 = vld [vmem:[#allocation5 + $0x60] ss:$12 sps:$4 sm:$0xff]   ;;  %v1853_v20 = vld [vmem:[#allocation5 + $0x7c] ss:$12 sps:$4 sm:$0xff]  }
  0x5c   : > { %1204 = vmatpush1.bf16.msra.mxu0 %v1834_v7  ;;  %1164 = vmatprep.subr.bf16.mxu1 %v1835_v8  ;;  %v1852_v19 = vld [vmem:[#allocation5 + $0x1e0] ss:$12 sps:$4 sm:$0xff]   ;;  %v1855_v21 = vld [vmem:[#allocation5 + $0x1fc] ss:$12 sps:$4 sm:$0xff]   ;;  %v1857_v22 = vld [vmem:[#allocation5 + $0x78] ss:$12 sps:$4 sm:$0xff]  }
  0x5d   : > { %1205 = vmatprep.subr.bf16.mxu0 %v1837_v9  ;;  %v1858_v23 = vld [vmem:[#allocation5 + $0x1f8] ss:$12 sps:$4 sm:$0xff]   ;;  %v1859_v24 = vld [vmem:[#allocation5 + $0x94] ss:$12 sps:$4 sm:$0xff]   ;;  %v1863_v26 = vld [vmem:[#allocation5 + $0x90] ss:$12 sps:$4 sm:$0xff]  }
  0x5e   : > { %v1861_v25 = vld [vmem:[#allocation5 + $0x214] ss:$12 sps:$4 sm:$0xff]   ;;  %v1864_v27 = vld [vmem:[#allocation5 + $0x210] ss:$12 sps:$4 sm:$0xff]   ;;  %v1865_v28 = vld [vmem:[#allocation5 + $0xac] ss:$12 sps:$4 sm:$0xff]  }
  0x5f   : > { %1165 = vmatpush1.bf16.msra.mxu1 %v1839_v10  ;;  %v1867_v29 = vld [vmem:[#allocation5 + $0x22c] ss:$12 sps:$4 sm:$0xff]   ;;  %v1869_v30 = vld [vmem:[#allocation5 + $0xa8] ss:$12 sps:$4 sm:$0xff]   ;;  %v1871_v32 = vld [vmem:[#allocation5 + $0xc4] ss:$12 sps:$4 sm:$0xff]  }
  0x60   : > { %1206 = vmatpush1.bf16.msra.mxu0 %v1840_v11  ;;  %1166 = vmatprep.subr.bf16.mxu1 %v1841_v12  ;;  %v1870_v31 = vld [vmem:[#allocation5 + $0x228] ss:$12 sps:$4 sm:$0xff]   ;;  %v1873_v33 = vld [vmem:[#allocation5 + $0x244] ss:$12 sps:$4 sm:$0xff]   ;;  %v1875_v34 = vld [vmem:[#allocation5 + $0xc0] ss:$12 sps:$4 sm:$0xff]  }
  0x61   : > { %1207 = vmatprep.subr.bf16.mxu0 %v1843_v13  ;;  %v1876_v35 = vld [vmem:[#allocation5 + $0x240] ss:$12 sps:$4 sm:$0xff]   ;;  %v1877_v36 = vld [vmem:[#allocation5 + $0xdc] ss:$12 sps:$4 sm:$0xff]   ;;  %v1881_v38 = vld [vmem:[#allocation5 + $0xd8] ss:$12 sps:$4 sm:$0xff]  }
  0x62   : > { %v1879_v37 = vld [vmem:[#allocation5 + $0x25c] ss:$12 sps:$4 sm:$0xff]   ;;  %v1882_v39 = vld [vmem:[#allocation5 + $0x258] ss:$12 sps:$4 sm:$0xff]   ;;  %v1883_v40 = vld [vmem:[#allocation5 + $0xf4] ss:$12 sps:$4 sm:$0xff]  }
  0x63   : > { %1167 = vmatpush1.bf16.msra.mxu1 %v1845_v14  ;;  %v1885_v41 = vld [vmem:[#allocation5 + $0x274] ss:$12 sps:$4 sm:$0xff]   ;;  %v1887_v42 = vld [vmem:[#allocation5 + $0xf0] ss:$12 sps:$4 sm:$0xff]   ;;  %v1889_v44 = vld [vmem:[#allocation5 + $0x10c] ss:$12 sps:$4 sm:$0xff]  }
  0x64   : > { %1208 = vmatpush1.bf16.msra.mxu0 %v1846_v15  ;;  %1168 = vmatprep.subr.bf16.mxu1 %v1847_v16  ;;  %v1888_v43 = vld [vmem:[#allocation5 + $0x270] ss:$12 sps:$4 sm:$0xff]   ;;  %v1891_v45 = vld [vmem:[#allocation5 + $0x28c] ss:$12 sps:$4 sm:$0xff]   ;;  %v1893_v46 = vld [vmem:[#allocation5 + $0x108] ss:$12 sps:$4 sm:$0xff]  }
  0x65   : > { %1209 = vmatprep.subr.bf16.mxu0 %v1849_v17  ;;  %v176_v47 = vld [vmem:[%s2311_s29] sm:$0xff]  ;;  %v177_v49 = vld [vmem:[%s2311_s29 + $0x8] sm:$0xff]  ;;  %s1762_s15 = smul.u32 12, %s2307_s19  ;;  %s1429_s3 = scalar_lea.sflag [#allocation4], %s2307_s19 }
  0x66   : > { %v2322_v48 = vcombine.high %v176_v47, %v176_v47  ;;  %v1894_v50 = vld [vmem:[#allocation5 + $0x288] ss:$12 sps:$4 sm:$0xff]   ;;  %v1895_v51 = vld [vmem:[#allocation5 + $0x124] ss:$12 sps:$4 sm:$0xff]   ;;  %v2325_v52 = vcombine.high %v177_v49, %v177_v49  ;;  %v1899_v54 = vld [vmem:[#allocation5 + $0x120] ss:$12 sps:$4 sm:$0xff]   ;;  %v2329_v6 = vcombine.low %v176_v47, %v176_v47  ;;  %v2331_v7 = vcombine.low %v177_v49, %v177_v49 }
  0x67   : > { %1169 = vmatpush1.bf16.msra.mxu1 %v1851_v18  ;;  %v1897_v53 = vld [vmem:[#allocation5 + $0x2a4] ss:$12 sps:$4 sm:$0xff]   ;;  %v1900_v55 = vld [vmem:[#allocation5 + $0x2a0] ss:$12 sps:$4 sm:$0xff]   ;;  %v1901_v56 = vld [vmem:[#allocation5 + $0x13c] ss:$12 sps:$4 sm:$0xff]  }
  0x68   : > { %1210 = vmatpush1.bf16.msra.mxu0 %v1852_v19  ;;  %1170 = vmatprep.subr.bf16.mxu1 %v1853_v20  ;;  %v1903_v57 = vld [vmem:[#allocation5 + $0x2bc] ss:$12 sps:$4 sm:$0xff]   ;;  %v1905_v58 = vld [vmem:[#allocation5 + $0x138] ss:$12 sps:$4 sm:$0xff]   ;;  %v1907_v60 = vld [vmem:[#allocation5 + $0x154] ss:$12 sps:$4 sm:$0xff]  }
  0x69   : > { %1211 = vmatprep.subr.bf16.mxu0 %v1855_v21  ;;  %1192 = vmatprep.mubr.bf16.mxu1 %v2322_v48  ;;  %v1906_v59 = vld [vmem:[#allocation5 + $0x2b8] ss:$12 sps:$4 sm:$0xff]   ;;  %v1909_v61 = vld [vmem:[#allocation5 + $0x2d4] ss:$12 sps:$4 sm:$0xff]   ;;  %v1911_v62 = vld [vmem:[#allocation5 + $0x150] ss:$12 sps:$4 sm:$0xff]  }
  0x6a   : > { %1233 = vmatprep.mubr.bf16.mxu0 %v2325_v52  ;;  %v1912_v63 = vld [vmem:[#allocation5 + $0x2d0] ss:$12 sps:$4 sm:$0xff]   ;;  %v1913_v0 = vld [vmem:[#allocation5 + $0x16c] ss:$12 sps:$4 sm:$0xff]   ;;  %v1917_v2 = vld [vmem:[#allocation5 + $0x168] ss:$12 sps:$4 sm:$0xff]  }
  0x6b   : > { %1171 = vmatpush1.bf16.msra.mxu1 %v1857_v22  ;;  %v1915_v1 = vld [vmem:[#allocation5 + $0x2ec] ss:$12 sps:$4 sm:$0xff]   ;;  %v1918_v3 = vld [vmem:[#allocation5 + $0x2e8] ss:$12 sps:$4 sm:$0xff]   ;;  %v1925_v4 = vld [vmem:[#allocation5 + $0x304] ss:$12 sps:$4 sm:$0xff]  }
  0x6c   : > { %1212 = vmatpush1.bf16.msra.mxu0 %v1858_v23  ;;  %1172 = vmatprep.subr.bf16.mxu1 %v1859_v24  ;;  %v1926_v5 = vld [vmem:[#allocation5 + $0xc8] ss:$12 sps:$4 sm:$0xff]   ;;  %v1923_v8 = vld [vmem:[#allocation5 + $0x300] ss:$12 sps:$4 sm:$0xff]   ;;  %v1928_v12 = vld [vmem:[#allocation5 + $0x318] ss:$12 sps:$4 sm:$0xff]  }
  0x6d   : > { %1213 = vmatprep.subr.bf16.mxu0 %v1861_v25  ;;  %v1927_v9 = vld [vmem:[#allocation5 + $0x8] ss:$12 sps:$4 sm:$0xff]   ;;  %v1931_v11 = vld [vmem:[#allocation5 + $0xe0] ss:$12 sps:$4 sm:$0xff]   ;;  %v1936_v15 = vld [vmem:[#allocation5 + $0xf8] ss:$12 sps:$4 sm:$0xff]  }
  0x6e   : > { %v1930_v10 = vld [vmem:[#allocation5 + $0x31c] ss:$12 sps:$4 sm:$0xff]   ;;  %v1932_v13 = vld [vmem:[#allocation5 + $0x20] ss:$12 sps:$4 sm:$0xff]   ;;  %v1937_v17 = vld [vmem:[#allocation5 + $0x38] ss:$12 sps:$4 sm:$0xff]  }
  0x6f   : > { %1173 = vmatpush1.bf16.msra.mxu1 %v1863_v26  ;;  %v1935_v14 = vld [vmem:[#allocation5 + $0x334] ss:$12 sps:$4 sm:$0xff]   ;;  %v1933_v16 = vld [vmem:[#allocation5 + $0x330] ss:$12 sps:$4 sm:$0xff]   ;;  %v1940_v18 = vld [vmem:[#allocation5 + $0x34c] ss:$12 sps:$4 sm:$0xff]  }
  0x70   : > { %1214 = vmatpush1.bf16.msra.mxu0 %v1864_v27  ;;  %1174 = vmatprep.subr.bf16.mxu1 %v1865_v28  ;;  %v1941_v19 = vld [vmem:[#allocation5 + $0x110] ss:$12 sps:$4 sm:$0xff]   ;;  %v1938_v20 = vld [vmem:[#allocation5 + $0x348] ss:$12 sps:$4 sm:$0xff]   ;;  %v1943_v24 = vld [vmem:[#allocation5 + $0x360] ss:$12 sps:$4 sm:$0xff]  }
  0x71   : > { %1215 = vmatprep.subr.bf16.mxu0 %v1867_v29  ;;  %v1942_v21 = vld [vmem:[#allocation5 + $0x50] ss:$12 sps:$4 sm:$0xff]   ;;  %v1946_v23 = vld [vmem:[#allocation5 + $0x128] ss:$12 sps:$4 sm:$0xff]   ;;  %v1951_v27 = vld [vmem:[#allocation5 + $0x140] ss:$12 sps:$4 sm:$0xff]  }
  0x72   : > { %v1945_v22 = vld [vmem:[#allocation5 + $0x364] ss:$12 sps:$4 sm:$0xff]   ;;  %v1947_v25 = vld [vmem:[#allocation5 + $0x68] ss:$12 sps:$4 sm:$0xff]   ;;  %v1952_v29 = vld [vmem:[#allocation5 + $0x80] ss:$12 sps:$4 sm:$0xff]  }
  0x73   : > { %1175 = vmatpush1.bf16.msra.mxu1 %v1869_v30  ;;  %v1950_v26 = vld [vmem:[#allocation5 + $0x37c] ss:$12 sps:$4 sm:$0xff]   ;;  %v1948_v28 = vld [vmem:[#allocation5 + $0x378] ss:$12 sps:$4 sm:$0xff]   ;;  %v1955_v30 = vld [vmem:[#allocation5 + $0x394] ss:$12 sps:$4 sm:$0xff]  }
  0x74   : > { %1216 = vmatpush1.bf16.msra.mxu0 %v1870_v31  ;;  %1176 = vmatprep.subr.bf16.mxu1 %v1871_v32  ;;  %v1956_v31 = vld [vmem:[#allocation5 + $0x158] ss:$12 sps:$4 sm:$0xff]   ;;  %v1953_v32 = vld [vmem:[#allocation5 + $0x390] ss:$12 sps:$4 sm:$0xff]   ;;  %v1972_v47 = vld [vmem:[#allocation5 + $0x1a0] ss:$12 sps:$4 sm:$0xff]  }
  0x75   : > { %1217 = vmatprep.subr.bf16.mxu0 %v1873_v33  ;;  %v1957_v33 = vld [vmem:[#allocation5 + $0x98] ss:$12 sps:$4 sm:$0xff]   ;;  %s174_s17 = scalar_lea.vmem [#allocation7], %s1762_s15  ;;  %s1763_s20 = smul.u32 192, %s2192_s13 }
  0x76   : > { %v1976_v49 = vld [vmem:[#allocation5 + $0x278] ss:$12 sps:$4 sm:$0xff]   ;;  %s1443_s22 = sshll.u32 %s174_s17, 4  ;;  %s2155_s13 = smov [#allocation7]   ;;  %s2351_s22 = int_to_ptr.vmem [resolvable:$true] %s1443_s22 }
  0x77   : > { %1177 = vmatpush1.bf16.msra.mxu1 %v1875_v34  ;;  %v1960_v34 = vld [vmem:[#allocation5 + $0x3ac] ss:$12 sps:$4 sm:$0xff]   ;;  %s2349_s30 = scalar_lea.hbm %s2395_s2, %s1763_s20  ;;  %s2079_s4 = scalar_lea.vmem %s2351_s22, 192 }
  0x78   : > { %1218 = vmatpush1.bf16.msra.mxu0 %v1876_v35  ;;  %1178 = vmatprep.subr.bf16.mxu1 %v1877_v36  ;;  %v1961_v35 = vld [vmem:[#allocation5 + $0x170] ss:$12 sps:$4 sm:$0xff]   ;;  %v1958_v36 = vld [vmem:[#allocation5 + $0x3a8] ss:$12 sps:$4 sm:$0xff]   ;;  %p2080_p4 = scmp.ne.s32.totalorder %s2351_s22, %s2079_s4  ;;  %s2083_s5 = sshll.u32 %s2155_s13, 4  ;;  %s2084_s5 = int_to_ptr.vmem [resolvable:$false] %s2083_s5 }
  0x79   : > { %1219 = vmatprep.subr.bf16.mxu0 %v1879_v37  ;;  %v1962_v37 = vld [vmem:[#allocation5 + $0xb0] ss:$12 sps:$4 sm:$0xff]   ;;  %s2085_s6 = scalar_lea.vmem %s2084_s5, 384  ;;  %p2086_p10 = scmp.lt.s32.totalorder %s2351_s22, %s2084_s5 }
  0x7a   : > { %p2081_p6 = pnand %p2080_p4, %p2262_p12  ;;  %p2087_p11 = scmp.lt.s32.totalorder %s2085_s6, %s2079_s4 }
  0x7b   : > { %1179 = vmatpush1.bf16.msra.mxu1 %v1881_v38  ;;  %v1965_v38 = vld [vmem:[#allocation5 + $0x3c4] ss:$12 sps:$4 sm:$0xff]  }
  0x7c   : > { %1220 = vmatpush1.bf16.msra.mxu0 %v1882_v39  ;;  %1180 = vmatprep.subr.bf16.mxu1 %v1883_v40  ;;  %v1966_v39 = vld [vmem:[#allocation5 + $0x248] ss:$12 sps:$4 sm:$0xff]   ;;  %v1963_v40 = vld [vmem:[#allocation5 + $0x3c0] ss:$12 sps:$4 sm:$0xff]   ;;  %p2082_p8 = pneg %p2081_p6  ;;  %p2088_p3 = por %p2087_p11, %p2086_p10 }
  0x7d   : > { %1221 = vmatprep.subr.bf16.mxu0 %v1885_v41  ;;  %v1967_v41 = vld [vmem:[#allocation5 + $0x188] ss:$12 sps:$4 sm:$0xff]  }
  0x7e   : > { %p2089_p7 = pnand %p2088_p3, %p2082_p8 }
  0x7f   : > { %1181 = vmatpush1.bf16.msra.mxu1 %v1887_v42  ;;  %v1970_v42 = vld [vmem:[#allocation5 + $0x3dc] ss:$12 sps:$4 sm:$0xff]  }
  0x80   : > { %1222 = vmatpush1.bf16.msra.mxu0 %v1888_v43  ;;  %1182 = vmatprep.subr.bf16.mxu1 %v1889_v44  ;;  %v178_v43 = vld [vmem:[%s2311_s29 + $0x10] sm:$0xff] }
  0x81   : > { %1223 = vmatprep.subr.bf16.mxu0 %v1891_v45  ;;  %v1971_v44 = vld [vmem:[#allocation5 + $0x260] ss:$12 sps:$4 sm:$0xff]   ;;  %v2337_v45 = vcombine.high %v178_v43, %v178_v43 }
  0x83   : > { %1183 = vmatpush1.bf16.msra.mxu1 %v1893_v46  ;;  %v1968_v46 = vld [vmem:[#allocation5 + $0x3d8] ss:$12 sps:$4 sm:$0xff]  }
  0x84   : > { %1224 = vmatpush1.bf16.msra.mxu0 %v1894_v50  ;;  %1184 = vmatprep.subr.bf16.mxu1 %v1895_v51  ;;  %v1973_v50 = vld [vmem:[#allocation5 + $0x3f0] ss:$12 sps:$4 sm:$0xff]   ;;  %v1977_v51 = vld [vmem:[#allocation5 + $0x1b8] ss:$12 sps:$4 sm:$0xff]  }
  0x85   : > { %1225 = vmatprep.subr.bf16.mxu0 %v1897_v53  ;;  %v1980_v53 = vld [vmem:[#allocation5 + $0x40c] ss:$12 sps:$4 sm:$0xff]  }
  0x87   : > { %1185 = vmatpush1.bf16.msra.mxu1 %v1899_v54  ;;  %v1981_v54 = vld [vmem:[#allocation5 + $0x290] ss:$12 sps:$4 sm:$0xff]  }
  0x88   : > { %1226 = vmatpush1.bf16.msra.mxu0 %v1900_v55  ;;  %1186 = vmatprep.subr.bf16.mxu1 %v1901_v56  ;;  %v1978_v55 = vld [vmem:[#allocation5 + $0x408] ss:$12 sps:$4 sm:$0xff]   ;;  %v1982_v56 = vld [vmem:[#allocation5 + $0x1d0] ss:$12 sps:$4 sm:$0xff]  }
  0x89   : > { %1227 = vmatprep.subr.bf16.mxu0 %v1903_v57  ;;  %v1985_v57 = vld [vmem:[#allocation5 + $0x424] ss:$12 sps:$4 sm:$0xff]  }
  0x8b   : > { %1187 = vmatpush1.bf16.msra.mxu1 %v1905_v58  ;;  %v1986_v58 = vld [vmem:[#allocation5 + $0x2a8] ss:$12 sps:$4 sm:$0xff]  }
  0x8c   : > { %1228 = vmatpush1.bf16.msra.mxu0 %v1906_v59  ;;  %1188 = vmatprep.subr.bf16.mxu1 %v1907_v60  ;;  %v1983_v59 = vld [vmem:[#allocation5 + $0x420] ss:$12 sps:$4 sm:$0xff]   ;;  %v1987_v60 = vld [vmem:[#allocation5 + $0x1e8] ss:$12 sps:$4 sm:$0xff]  }
  0x8d   : > { %1229 = vmatprep.subr.bf16.mxu0 %v1909_v61  ;;  %v1991_v61 = vld [vmem:[#allocation5 + $0x2c0] ss:$12 sps:$4 sm:$0xff]  }
  0x8f   : > { %1189 = vmatpush1.bf16.msra.mxu1 %v1911_v62  ;;  %v1988_v62 = vld [vmem:[#allocation5 + $0x438] ss:$12 sps:$4 sm:$0xff]  }
  0x90   : > { %1230 = vmatpush1.bf16.msra.mxu0 %v1912_v63  ;;  %1190 = vmatprep.subr.bf16.mxu1 %v1913_v0  ;;  %v1992_v63 = vld [vmem:[#allocation5 + $0x200] ss:$12 sps:$4 sm:$0xff]  }
  0x91   : > { %1231 = vmatprep.subr.bf16.mxu0 %v1915_v1  ;;  %v1995_v0 = vld [vmem:[#allocation5 + $0x454] ss:$12 sps:$4 sm:$0xff]   ;;  %v1996_v1 = vld [vmem:[#allocation5 + $0x2d8] ss:$12 sps:$4 sm:$0xff]  }
  0x93   : > { %1191 = vmatpush1.bf16.msra.mxu1 %v1917_v2  ;;  %v1993_v2 = vld [vmem:[#allocation5 + $0x450] ss:$12 sps:$4 sm:$0xff]  }
  0x94   : > { %1232 = vmatpush1.bf16.msra.mxu0 %v1918_v3  ;;  %1687 = vmatprep.subr.bf16.mxu1 %v1926_v5  ;;  %v1997_v3 = vld [vmem:[#allocation5 + $0x218] ss:$12 sps:$4 sm:$0xff]   ;;  %v2001_v5 = vld [vmem:[#allocation5 + $0x2f0] ss:$12 sps:$4 sm:$0xff]  }
  0x95   : > { %1242 = vmatprep.subr.bf16.mxu0 %v1925_v4  ;;  %v2000_v4 = vld [vmem:[#allocation5 + $0x46c] ss:$12 sps:$4 sm:$0xff]  }
  0x96   : > { %1193 = vmatmul.mubr.bf16.vlgmr.msra.gmra.mrb[0].mxu1 %v2329_v6 }
  0x97   : > { %1234 = vmatmul.mubr.bf16.vlgmr.msra.gmra.mrb[0].mxu0 %v2331_v7  ;;  %1688 = vmatpush3.bf16.msra.mxu1 %v1927_v9  ;;  %v2005_v9 = vld [vmem:[#allocation5 + $0x3c8] ss:$12 sps:$4 sm:$0xff]  }
  0x98   : > { %1243 = vmatpush1.bf16.msra.mxu0 %v1923_v8  ;;  %1689 = vmatprep.subr.bf16.mxu1 %v1931_v11  ;;  %v2002_v8 = vld [vmem:[#allocation5 + $0x230] ss:$12 sps:$4 sm:$0xff]   ;;  %v2006_v11 = vld [vmem:[#allocation5 + $0x308] ss:$12 sps:$4 sm:$0xff]  }
  0x99   : > { %1244 = vmatprep.subr.bf16.mxu0 %v1930_v10  ;;  %1315 = vmatprep.mubr.bf16.mxu1 %v2322_v48  ;;  %v1975_v48 = vld [vmem:[#allocation5 + $0x3f4] ss:$12 sps:$4 sm:$0xff]   ;;  %v1534_v10 = vcombine.low %v178_v43, %v178_v43 }
  0x9a   : > { %1274 = vmatprep.mubr.bf16.mxu0 %v2337_v45 }
  0x9b   : > { %1690 = vmatpush3.bf16.msra.mxu1 %v1932_v13  ;;  %v2008_v13 = vld [vmem:[#allocation5 + $0x320] ss:$12 sps:$4 sm:$0xff]  }
  0x9c   : > { %1245 = vmatpush1.bf16.msra.mxu0 %v1928_v12  ;;  %1691 = vmatprep.subr.bf16.mxu1 %v1936_v15  ;;  %v2007_v12 = vld [vmem:[#allocation5 + $0x3e0] ss:$12 sps:$4 sm:$0xff]   ;;  %v2010_v15 = vld [vmem:[#allocation5 + $0x338] ss:$12 sps:$4 sm:$0xff]  }
  0x9d   : > { %1246 = vmatprep.subr.bf16.mxu0 %v1935_v14  ;;  %v2009_v14 = vld [vmem:[#allocation5 + $0x3f8] ss:$12 sps:$4 sm:$0xff]  }
  0x9f   : > { %1692 = vmatpush3.bf16.msra.mxu1 %v1937_v17  ;;  %v2012_v17 = vld [vmem:[#allocation5 + $0x350] ss:$12 sps:$4 sm:$0xff]  }
  0xa0   : > { %1247 = vmatpush1.bf16.msra.mxu0 %v1933_v16  ;;  %1693 = vmatprep.subr.bf16.mxu1 %v1941_v19  ;;  %v2011_v16 = vld [vmem:[#allocation5 + $0x410] ss:$12 sps:$4 sm:$0xff]   ;;  %v2014_v19 = vld [vmem:[#allocation5 + $0x368] ss:$12 sps:$4 sm:$0xff]  }
  0xa1   : > { %1248 = vmatprep.subr.bf16.mxu0 %v1940_v18  ;;  %v2013_v18 = vld [vmem:[#allocation5 + $0x428] ss:$12 sps:$4 sm:$0xff]  }
  0xa3   : > { %1694 = vmatpush3.bf16.msra.mxu1 %v1942_v21  ;;  %v2017_v21 = vld [vmem:[#allocation5 + $0x458] ss:$12 sps:$4 sm:$0xff]  }
  0xa4   : > { %1249 = vmatpush1.bf16.msra.mxu0 %v1938_v20  ;;  %1695 = vmatprep.subr.bf16.mxu1 %v1946_v23  ;;  %v2015_v20 = vld [vmem:[#allocation5 + $0x440] ss:$12 sps:$4 sm:$0xff]   ;;  %v2019_v23 = vld [vmem:[#allocation5 + $0x470] ss:$12 sps:$4 sm:$0xff]  }
  0xa5   : > { %1250 = vmatprep.subr.bf16.mxu0 %v1945_v22  ;;  %v2018_v22 = vld [vmem:[#allocation5 + $0x398] ss:$12 sps:$4 sm:$0xff]  }
  0xa7   : > { %1696 = vmatpush3.bf16.msra.mxu1 %v1947_v25 }
  0xa8   : > { %1251 = vmatpush1.bf16.msra.mxu0 %v1943_v24  ;;  %1697 = vmatprep.subr.bf16.mxu1 %v1951_v27  ;;  %v2020_v24 = vld [vmem:[#allocation5 + $0x3b0] ss:$12 sps:$4 sm:$0xff]  }
  0xa9   : > { %1252 = vmatprep.subr.bf16.mxu0 %v1950_v26 }
  0xab   : > { %1698 = vmatpush3.bf16.msra.mxu1 %v1952_v29 }
  0xac   : > { %1253 = vmatpush1.bf16.msra.mxu0 %v1948_v28  ;;  %1699 = vmatprep.subr.bf16.mxu1 %v1956_v31 }
  0xad   : > { %1254 = vmatprep.subr.bf16.mxu0 %v1955_v30 }
  0xaf   : > { %1700 = vmatpush3.bf16.msra.mxu1 %v1957_v33 }
  0xb0   : > { %1255 = vmatpush1.bf16.msra.mxu0 %v1953_v32  ;;  %1701 = vmatprep.subr.bf16.mxu1 %v1961_v35 }
  0xb1   : > { %1256 = vmatprep.subr.bf16.mxu0 %v1960_v34 }
  0xb3   : > { %1702 = vmatpush3.bf16.msra.mxu1 %v1962_v37 }
  0xb4   : > { %1257 = vmatpush1.bf16.msra.mxu0 %v1958_v36  ;;  %1709 = vmatprep.subr.bf16.mxu1 %v1966_v39 }
  0xb5   : > { %1258 = vmatprep.subr.bf16.mxu0 %v1965_v38 }
  0xb6   : > { %1316 = vmatmul.mubr.bf16.vlgmr.msra.gmra.mrb[4].mxu1 %v2329_v6  ;;  %v1998_v6 = vld [vmem:[#allocation5 + $0x468] ss:$12 sps:$4 sm:$0xff]  }
  0xb7   : > { %1710 = vmatpush3.bf16.msra.mxu1 %v1967_v41  ;;  %1355 = vmatprep.mubr.bf16.mxu1 %v2325_v52  ;;  %v1990_v52 = vld [vmem:[#allocation5 + $0x43c] ss:$12 sps:$4 sm:$0xff]  }
  0xb8   : > { %1259 = vmatpush1.bf16.msra.mxu0 %v1963_v40  ;;  %1711 = vmatprep.subr.bf16.mxu1 %v1971_v44 }
  0xb9   : > { %1260 = vmatprep.subr.bf16.mxu0 %v1970_v42 }
  0xbb   : > { %1712 = vmatpush3.bf16.msra.mxu1 %v1972_v47  ;;  %v1403_v47 = vlaneseq }
  0xbc   : > { %1261 = vmatpush1.bf16.msra.mxu0 %v1968_v46  ;;  %1713 = vmatprep.subr.bf16.mxu1 %v1976_v49 }
  0xbd   : > { %1262 = vmatprep.subr.bf16.mxu0 %v1975_v48  ;;  %v1404_v48 = vand.u32 127, %v1403_v47 }
  0xbf   : > { %1714 = vmatpush3.bf16.msra.mxu1 %v1977_v51  ;;  %v1406_v49 = vadd.s32 256, %v1404_v48 }
  0xc0   : > { %1263 = vmatpush1.bf16.msra.mxu0 %v1973_v50  ;;  %1715 = vmatprep.subr.bf16.mxu1 %v1981_v54 }
  0xc1   : > { %1264 = vmatprep.subr.bf16.mxu0 %v1980_v53  ;;  %vm1409_vm0 = vcmp.eq.s32.totalorder %v1406_v49, 288 }
  0xc3   : > { %1716 = vmatpush3.bf16.msra.mxu1 %v1982_v56 }
  0xc4   : > { %1265 = vmatpush1.bf16.msra.mxu0 %v1978_v55  ;;  %1717 = vmatprep.subr.bf16.mxu1 %v1986_v58 }
  0xc5   : > { %1266 = vmatprep.subr.bf16.mxu0 %v1985_v57 }
  0xc7   : > { %1718 = vmatpush3.bf16.msra.mxu1 %v1987_v60 }
  0xc8   : > { %1267 = vmatpush1.bf16.msra.mxu0 %v1983_v59  ;;  %1719 = vmatprep.subr.bf16.mxu1 %v1991_v61 }
  0xc9   : > { %1268 = vmatprep.subr.bf16.mxu0 %v1990_v52 }
  0xcb   : > { %1720 = vmatpush3.bf16.msra.mxu1 %v1992_v63 }
  0xcc   : > { %1269 = vmatpush1.bf16.msra.mxu0 %v1988_v62  ;;  %1721 = vmatprep.subr.bf16.mxu1 %v1996_v1 }
  0xcd   : > { %1270 = vmatprep.subr.bf16.mxu0 %v1995_v0 }
  0xcf   : > { %1722 = vmatpush3.bf16.msra.mxu1 %v1997_v3 }
  0xd0   : > { %1271 = vmatpush1.bf16.msra.mxu0 %v1993_v2  ;;  %1723 = vmatprep.subr.bf16.mxu1 %v2001_v5 }
  0xd1   : > { %1272 = vmatprep.subr.bf16.mxu0 %v2000_v4 }
  0xd3   : > { %1724 = vmatpush3.bf16.msra.mxu1 %v2002_v8 }
  0xd4   : > { %1273 = vmatpush1.bf16.msra.mxu0 %v1998_v6  ;;  %1731 = vmatprep.subr.bf16.mxu1 %v2005_v9 }
  0xd6   : > { %1356 = vmatmul.mubr.bf16.vlgmr.msra.gmra.mrb[8].mxu1 %v2331_v7  ;;  %v2016_v7 = vld [vmem:[#allocation5 + $0x380] ss:$12 sps:$4 sm:$0xff]  }
  0xd7   : > { %1275 = vmatmul.mubr.bf16.vlgmr.msra.gmra.mrb[0].mxu0 %v1534_v10  ;;  %1732 = vmatpush3.bf16.msra.mxu1 %v2006_v11 }
  0xd8   : > { %1395 = vmatprep.mubr.bf16.mxu1 %v2337_v45  ;;  %1733 = vmatprep.subr.bf16.mxu1 %v2007_v12 }
  0xdb   : > { %1734 = vmatpush3.bf16.msra.mxu1 %v2008_v13 }
  0xdc   : > { %1735 = vmatprep.subr.bf16.mxu1 %v2009_v14 }
  0xdf   : > { %1736 = vmatpush3.bf16.msra.mxu1 %v2010_v15 }
  0xe0   : > { %1737 = vmatprep.subr.bf16.mxu1 %v2011_v16 }
  0xe3   : > { %1738 = vmatpush3.bf16.msra.mxu1 %v2012_v17 }
  0xe4   : > { %1739 = vmatprep.subr.bf16.mxu1 %v2013_v18 }
  0xe7   : > { %1740 = vmatpush3.bf16.msra.mxu1 %v2014_v19 }
  0xe8   : > { %1741 = vmatprep.subr.bf16.mxu1 %v2015_v20 }
  0xeb   : > { %1742 = vmatpush3.bf16.msra.mxu1 %v2016_v7 }
  0xec   : > { %1743 = vmatprep.subr.bf16.mxu1 %v2017_v21 }
  0xef   : > { %1744 = vmatpush3.bf16.msra.mxu1 %v2018_v22 }
  0xf0   : > { %1745 = vmatprep.subr.bf16.mxu1 %v2019_v23 }
  0xf3   : > { %1746 = vmatpush3.bf16.msra.mxu1 %v2020_v24 }
  0xf6   : > { %1396 = vmatmul.mubr.bf16.vlgmr.msra.gmra.mrb[12].mxu1 %v1534_v10 }
 0x169   : > { %v1194_v25 = vpop.f32.mrb[0].mxu1 }
 0x16a   : > { %v1196_v26 = vpop.f32.mrb[1].mxu1 }
 0x16b   : > { %v1198_v27 = vpop.f32.mrb[2].mxu1 }
 0x16c   : > { %v1199_v28 = vpop.f32.mrb[3].mxu1 }
 0x189   : > { %v1703_v29 = vpop.f32.mrb[4].mxu1 }
 0x18a   : > { %v1704_v30 = vpop.f32.mrb[5].mxu1 }
 0x18b   : > { %v1705_v31 = vadd.f32 %v1704_v30, %v1703_v29  ;;  %v1706_v32 = vpop.f32.mrb[6].mxu1 }
 0x18c   : > { %v1707_v33 = vpop.f32.mrb[7].mxu1 }
 0x1a9   : > { %v1725_v35 = vpop.f32.mrb[8].mxu1 }
 0x1aa   : > { %v1276_v34 = vpop.f32.mrb[0].mxu0  ;;  %v1726_v38 = vpop.f32.mrb[9].mxu1 }
 0x1ab   : > { %v1753_v36 = vadd.f32 %v1276_v34, %v1194_v25  ;;  %v1278_v37 = vpop.f32.mrb[1].mxu0  ;;  %v1727_v40 = vadd.f32 %v1726_v38, %v1725_v35  ;;  %v1728_v42 = vpop.f32.mrb[10].mxu1 }
 0x1ac   : > { %v1754_v39 = vadd.f32 %v1278_v37, %v1196_v26  ;;  %v1280_v41 = vpop.f32.mrb[2].mxu0  ;;  %v1729_v44 = vpop.f32.mrb[11].mxu1 }
 0x1ad   : > { %v1281_v43 = vpop.f32.mrb[3].mxu0  ;;  %v1358_v46 = vadd.f32 %v1727_v40, %v1705_v31 }
 0x1ae   : > { %v1685_v45 = vpack.c.bf16 %v1754_v39, %v1753_v36 }
 0x1b0   : > { %1426 = vst [vmem:[%s174_s17] sm:$0xff] %v1685_v45 }
 0x1c9   : > { %v1747_v50 = vpop.f32.mrb[12].mxu1 }
 0x1ca   : > { %v1748_v51 = vpop.f32.mrb[13].mxu1 }
 0x1cb   : > { %v1749_v53 = vadd.f32 %v1748_v51, %v1747_v50  ;;  %v1750_v54 = vpop.f32.mrb[14].mxu1 }
 0x1cc   : > { %v1751_v55 = vpop.f32.mrb[15].mxu1 }
 0x1cd   : > { %v1398_v56 = vadd.f32 %v1749_v53, %v1358_v46 }
 0x1cf   : > { %v1412_v57 = vsel %vm1409_vm0, 1.0, %v1398_v56 }
 0x1d0   : > { %v1686_v58 = vpack.c.bf16 %v1412_v57, %v1412_v57 }
 0x1d2   : > { %1427 = vst [vmem:[%s174_s17 + $0x8] sm:$0xf] %v1686_v58 }
 0x1d3   : > { %2092 = shalt.err (!%p2089_p7)
}
 0x1d4   : > { %s2093_s7 = scalar_lea.hbm %s2349_s30, 192  ;;  %s2097_s25 = scalar_lea.hbm %s2395_s2, 384 }
 0x1d5   : > { %p2094_p9 = scmp.ne.s32.totalorder %s2349_s30, %s2093_s7  ;;  %p2098_p0 = scmp.lt.u32.totalorder %s2349_s30, %s2395_s2 }
 0x1d6   : > { %p2099_p13 = scmp.lt.u32.totalorder %s2097_s25, %s2093_s7  ;;  %p2101_p4 = scmp.lt.u32.totalorder %s2093_s7, %s2349_s30 }
 0x1d7   : > { %p2095_p2 = pnand %p2094_p9, %p2262_p12 }
 0x1d8   : > { %p2100_p1 = por %p2099_p13, %p2098_p0 }
 0x1d9   : > { %p2096_p5 = pneg %p2095_p2 }
 0x1da   : > { %p2102_p6 = por %p2101_p4, %p2100_p1 }
 0x1dc   : > { %p2103_p8 = pnand %p2102_p6, %p2096_p5 }
 0x1de   : > { %2106 = shalt.err (!%p2103_p8)
}
 0x1df   : > { %1770 = dma.vmem_to_hbm [thread:$0]  (%p2262_p12), %s2351_s22, 192, %s2349_s30, %s1429_s3  }
 0x1e0 PF: > { %s1455_s26 = sand.u32 1, %s2137_s9   ;;  %p2410_p10 = scmp.ne.s32.totalorder %s2400_s16, 0 }
 0x1e1   : > { %p2411_p11 = scmp.ge.s32.totalorder %s2149_s12, 2  ;;  %s1456_s29 = scalar_lea.sflag [#allocation4], %s1455_s26 }
 0x1e3   : > { %p1781_p3 = pnand %p2411_p11, %p2410_p10 }
 0x1e5   : > { %2132 = dma.done.wait (!%p1781_p3), %s1456_s29, 192  }
 0x1e6   : > { %2134 = vsyncadd (!%p1781_p3), %s1456_s29, 4294967104  ;;  %p16_p7 = scmp.ge.s32.totalorder %s2227_s21, 4   ;;  %s2412_s9 = smov %s2141_s10 }
 0x1e7   : > { %s2413_s10 = smov %s2145_s11  ;;  %s2414_s11 = smov %s2258_s8 }
 0x1e8   : > { %s2415_s12 = smov %s2227_s21  ;;  %18 = sbr.rel (!%p16_p7) target bundleno = 6 (0x6), region = 77 }
 0x1ef   :  { %1461 = vsyncpa [#allocation3], 1 }
 0x1f0   :  { %1463 = vsyncpa [#allocation3 + $0x1], 1 }
 0x1f1   :  { %1464 = vsyncpa [#allocation6], 1 }
 0x1f2   :  { %1465 = vsyncpa [#allocation4], 1 }
 0x1f3   :  { %1467 = vsyncpa [#allocation4 + $0x1], 1 }

</bundles_post_ra>
